<compile_context>
chip_gen: v7x
topology: tpu7x:2x2x1
jax: 0.10.0
libtpu: 0.0.40
codegen_flags: <defaults>
</compile_context>

<pallas_src>
import math
import jax
import jax.numpy as jnp
from jax import lax
from jax.experimental import pallas as pl
from jax.experimental.pallas import tpu as pltpu


def _make_lgfa_kernel(n_kv, tk, C, use_bf16_exp):
    """Builds the flash-style LGFA kernel body (one invocation = one (batch, q-tile))."""

    def kernel(xq_ref, xkv_ref, wq_ref, bq_ref, wk_ref, bk_ref, wv_ref, bv_ref, o_ref):
        # xq_ref : (tq, C)   f32   query tile of x (also the residual)
        # xkv_ref: (N,  C)   f32   whole kv slab of x, resident per batch
        # wq_ref : (C, C8p)  bf16  zero-padded to 128 lanes, pre-scaled by 1/sqrt(d_k)
        # bq_ref : (1, C8p)  f32   pre-scaled, zero-padded
        # wk_ref / bk_ref          same layout, unscaled key projection
        # wv_ref : (C, C+1)  bf16  [gamma*wv | 0]; bv_ref (1, C+1) f32 [gamma*bv | 1]
        #          -> v's last column is exactly 1.0, so the PV matmul also
        #             accumulates the softmax denominator (no per-step lane sum).
        tq = xq_ref.shape[0]

        xq_f32 = xq_ref[...]                                            # residual, f32
        q = jnp.dot(xq_f32.astype(jnp.bfloat16), wq_ref[...],
                    preferred_element_type=jnp.float32) + bq_ref[...]   # (tq, C8p)
        q = q.astype(jnp.bfloat16)                                      # pre-scaled by 1/sqrt(d_k)

        m0 = jnp.full((tq, 1), -jnp.inf, dtype=jnp.float32)
        acc0 = jnp.zeros((tq, C + 1), dtype=jnp.float32)

        def body(j, carry):
            m_prev, acc = carry
            start = pl.multiple_of(j * tk, tk)
            xkv = xkv_ref[pl.ds(start, tk), :].astype(jnp.bfloat16)               # (tk, C)
            k = (jnp.dot(xkv, wk_ref[...], preferred_element_type=jnp.float32)
                 + bk_ref[...]).astype(jnp.bfloat16)                              # (tk, C8p)
            v = (jnp.dot(xkv, wv_ref[...], preferred_element_type=jnp.float32)
                 + bv_ref[...]).astype(jnp.bfloat16)                              # (tk, C+1)

            # energy tile: contract the lane-dense padded axes (no k.T / transpose)
            s = lax.dot_general(q, k,
                                dimension_numbers=(((1,), (1,)), ((), ())),
                                preferred_element_type=jnp.float32)               # (tq, tk)

            # online softmax update (f32 statistics)
            m_new = jnp.maximum(m_prev, jnp.max(s, axis=-1, keepdims=True))
            alpha = jnp.exp(m_prev - m_new)
            d = s - m_new
            if use_bf16_exp:       # bf16 EUP on v6e/v7x; keep f32 on v5e and earlier
                p = jnp.exp(d.astype(jnp.bfloat16))
            else:
                p = jnp.exp(d).astype(jnp.bfloat16)
            acc = alpha * acc + jnp.dot(p, v, preferred_element_type=jnp.float32)
            return m_new, acc

        _, acc = lax.fori_loop(0, n_kv, body, (m0, acc0), unroll=(n_kv <= 8))

        inv_l = pl.reciprocal(acc[:, C:C + 1], approx=True)                        # EUP
        # gamma and 1/sqrt(d_k) already folded into the weights -> just normalize
        # and add the residual.
        # TODO(synk): lane-dense (tq*C/128, 128) output repack would make this an
        # unmasked vst for C < 128; measure the in-kernel relayout cost first.
        o_ref[...] = (acc[:, :C] * inv_l + xq_f32).astype(o_ref.dtype)

    return kernel


def stcsa_forward(x_nchw, params, *, tq=512, tk=512, bf16_exp=None):
    """x_nchw: (B, C, H, W) float32.  Returns (B, C, H, W)."""
    B, C, H, W = x_nchw.shape
    N = H * W
    C8 = params["wq"].shape[1]                       # true d_k (unpadded)
    C8_pad = max(128, ((C8 + 127) // 128) * 128)     # lane-dense q/k projection width

    tq = min(tq, N)
    tk = min(tk, N)
    # v7x megacore: keep the parallel extent B * (N // tq) >= 2 when possible.
    while B * (N // tq) < 2 and tq > 8 and tq % 2 == 0 and N % (tq // 2) == 0:
        tq //= 2
    assert N % tq == 0 and N % tk == 0, "N=H*W must be divisible by the tiles"
    assert tq % 8 == 0 and tk % 8 == 0, "tiles must be sublane-aligned (x8)"

    if bf16_exp is None:
        kind = jax.devices()[0].device_kind.lower()
        bf16_exp = not any(v in kind for v in ("v2", "v3", "v4", "v5"))

    # glue: NCHW -> (B, N, C) channels-last (kept f32 so the residual is exact)
    # TODO(synk): produce/consume NHWC upstream/downstream to drop this HBM pass.
    x_bnc = jnp.transpose(x_nchw, (0, 2, 3, 1)).reshape(B, N, C)

    inv_sqrt_dk = 1.0 / math.sqrt(C8)                # uses the TRUE d_k, not the padded one
    gamma = jnp.asarray(params["gamma"], jnp.float32).reshape(())

    def pad_lanes(w, b, width):
        wp = jnp.zeros((C, width), jnp.float32).at[:, : w.shape[1]].set(w)
        bp = jnp.zeros((1, width), jnp.float32).at[:, : b.shape[1]].set(b)
        return wp, bp

    # q: pre-scaled by 1/sqrt(d_k), zero-padded to 128 lanes (padded cols contribute exact 0).
    wq_p, bq_p = pad_lanes(params["wq"] * inv_sqrt_dk, params["bq"] * inv_sqrt_dk, C8_pad)
    wk_p, bk_p = pad_lanes(params["wk"], params["bk"], C8_pad)
    # v: gamma folded in (scalar commutes with softmax @ v); extra zero-weight /
    # bias-1.0 column makes the PV matmul accumulate the softmax denominator.
    wv_a = jnp.concatenate([gamma * params["wv"], jnp.zeros((C, 1), jnp.float32)], axis=1)
    bv_a = jnp.concatenate([gamma * params["bv"], jnp.ones((1, 1), jnp.float32)], axis=1)

    wq_p, wk_p, wv_a = (w.astype(jnp.bfloat16) for w in (wq_p, wk_p, wv_a))
    bq_p, bk_p, bv_a = (b.astype(jnp.float32) for b in (bq_p, bk_p, bv_a))

    n_kv = N // tk
    kernel = _make_lgfa_kernel(n_kv=n_kv, tk=tk, C=C, use_bf16_exp=bf16_exp)
    full = lambda b, qi: (0, 0)  # noqa: E731  (whole-array parameter blocks)

    # VMEM budget: double-buffered blocks + weights + ~4 live (tq, tk) temporaries
    # (s, broadcast m, p, bf16 p) + cached q + accumulator, with 2x headroom.
    est = (2 * 4 * tq * C                                        # xq block (2x buffered)
           + 2 * 4 * N * C                                       # resident xkv slab (2x buffered)
           + 2 * 4 * tq * C                                      # out block (2x buffered)
           + 2 * 2 * C * (2 * C8_pad + C + 1)                    # bf16 weights (2x buffered)
           + 4 * (2 * C8_pad + C + 1)                            # f32 biases
           + 16 * tq * tk                                        # live (tq, tk) temporaries
           + 2 * tq * C8_pad                                     # cached q (bf16)
           + 8 * tq * (C + 2))                                   # acc / m statistics
    # Cap the scoped limit at 32 MiB: v7x only has 64 MiB physical VMEM, and at
    # the default tiles the real need is far below that on every generation.
    vmem_limit = int(min(max(2 * est, 16 * 1024 * 1024), 32 * 1024 * 1024))

    out_bnc = pl.pallas_call(
        kernel,
        out_shape=jax.ShapeDtypeStruct((B, N, C), x_bnc.dtype),
        grid_spec=pltpu.PrefetchScalarGridSpec(
            num_scalar_prefetch=0,
            grid=(B, N // tq),
            in_specs=[
                pl.BlockSpec((None, tq, C), lambda b, qi: (b, qi, 0)),  # x, q tile / residual
                pl.BlockSpec((None, N, C), lambda b, qi: (b, 0, 0)),    # x, kv slab (resident per b)
                pl.BlockSpec((C, C8_pad), full),                        # wq (pre-scaled, padded)
                pl.BlockSpec((1, C8_pad), full),                        # bq
                pl.BlockSpec((C, C8_pad), full),                        # wk (padded)
                pl.BlockSpec((1, C8_pad), full),                        # bk
                pl.BlockSpec((C, C + 1), full),                         # [gamma*wv | 0]
                pl.BlockSpec((1, C + 1), full),                         # [gamma*bv | 1]
            ],
            out_specs=pl.BlockSpec((None, tq, C), lambda b, qi: (b, qi, 0)),
        ),
        compiler_params=pltpu.CompilerParams(
            dimension_semantics=("parallel", "parallel"),
            vmem_limit_bytes=vmem_limit),
    )(x_bnc, x_bnc, wq_p, bq_p, wk_p, bk_p, wv_a, bv_a)

    # glue: (B, N, C) -> NCHW
    return jnp.transpose(out_bnc.reshape(B, H, W, C), (0, 3, 1, 2))


def _reference(x_nchw, params):
    """Pure-JAX f32 reference of the same forward (for validation)."""
    B, C, H, W = x_nchw.shape
    N = H * W
    x = jnp.transpose(x_nchw, (0, 2, 3, 1)).reshape(B, N, C)
    q = x @ params["wq"] + params["bq"]
    k = x @ params["wk"] + params["bk"]
    v = x @ params["wv"] + params["bv"]
    d_k = q.shape[-1]
    e = jnp.einsum("bnc,bmc->bnm", q, k) / math.sqrt(d_k)
    attn = jax.nn.softmax(e, axis=-1)
    out = jnp.einsum("bnm,bmc->bnc", attn, v)
    y = params["gamma"][0, 0] * out + x
    return jnp.transpose(y.reshape(B, H, W, C), (0, 3, 1, 2))


def make_params(key, feat_num):
    C = feat_num
    C8 = max(C // 8, 1)
    ks = jax.random.split(key, 6)
    scale = 1.0 / math.sqrt(C)
    params = {
        "wq": jax.random.normal(ks[0], (C, C8), jnp.float32) * scale,
        "bq": jax.random.normal(ks[1], (1, C8), jnp.float32) * 0.01,
        "wk": jax.random.normal(ks[2], (C, C8), jnp.float32) * scale,
        "bk": jax.random.normal(ks[3], (1, C8), jnp.float32) * 0.01,
        "wv": jax.random.normal(ks[4], (C, C), jnp.float32) * scale,
        "bv": jax.random.normal(ks[5], (1, C), jnp.float32) * 0.01,
        # nn.Parameter(torch.zeros(1)) in the original; nonzero here so the
        # attention path is numerically exercised by the check.
        "gamma": jnp.full((1, 1), 0.5, jnp.float32),
    }
    return params


if __name__ == "__main__":
    key = jax.random.PRNGKey(0)
    kx, kp = jax.random.split(key)

    B, C, H, W = 2, 16, 8, 8          # feat_num=16 -> reduced channels C8=2, N=64
    x = jax.random.normal(kx, (B, C, H, W), jnp.float32)
    params = make_params(kp, feat_num=C)

    # tq=tk=32 -> grid (2, 2) with a 2-step in-kernel kv loop: exercises the
    # q-tiling, the resident kv slab, and the online softmax; parallel extent
    # B * (N//tq) = 4 is even for v7x's two TensorCores.
    y = jax.block_until_ready(stcsa_forward(x, params, tq=32, tk=32))
    y_ref = jax.block_until_ready(_reference(x, params))

    assert y.shape == (B, C, H, W)
    max_err = float(jnp.max(jnp.abs(y - y_ref)))
    # bf16 MXU operands (+ bf16 exp on v6e/v7x) -> looser tolerance than f32-only.
    assert jnp.allclose(y, y_ref, atol=2e-2, rtol=2e-2), (
        f"mismatch vs reference (max abs err {max_err:.3e})")
    print("KERNEL_OK")
</pallas_src>

<mosaic_0001>
module attributes {stable_mosaic.version = 11 : i64} {
  func.func @kernel(%arg0: i32, %arg1: i32, %arg2: memref<1x32x16xf32, #tpu.memory_space<vmem>>, %arg3: memref<1x64x16xf32, #tpu.memory_space<vmem>>, %arg4: memref<16x128xbf16, #tpu.memory_space<vmem>>, %arg5: memref<1x128xf32, #tpu.memory_space<vmem>>, %arg6: memref<16x128xbf16, #tpu.memory_space<vmem>>, %arg7: memref<1x128xf32, #tpu.memory_space<vmem>>, %arg8: memref<16x17xbf16, #tpu.memory_space<vmem>>, %arg9: memref<1x17xf32, #tpu.memory_space<vmem>>, %arg10: memref<1x32x16xf32, #tpu.memory_space<vmem>>) attributes {dimension_semantics = [#tpu.dimension_semantics<parallel>, #tpu.dimension_semantics<parallel>], iteration_bounds = array<i64: 2, 2>, scalar_prefetch = 0 : i64, scratch_operands = 0 : i64, tpu.core_type = #tpu.core_type<tc>, window_params = [{transform_indices = @transform_0, window_bounds = array<i64: 1, 32, 16>}, {transform_indices = @transform_1, window_bounds = array<i64: 1, 64, 16>}, {pipeline_mode = #tpu.pipeline_mode<synchronous>, transform_indices = @transform_2, window_bounds = array<i64: 16, 128>}, {pipeline_mode = #tpu.pipeline_mode<synchronous>, transform_indices = @transform_3, window_bounds = array<i64: 1, 128>}, {pipeline_mode = #tpu.pipeline_mode<synchronous>, transform_indices = @transform_4, window_bounds = array<i64: 16, 128>}, {pipeline_mode = #tpu.pipeline_mode<synchronous>, transform_indices = @transform_5, window_bounds = array<i64: 1, 128>}, {pipeline_mode = #tpu.pipeline_mode<synchronous>, transform_indices = @transform_6, window_bounds = array<i64: 16, 17>}, {pipeline_mode = #tpu.pipeline_mode<synchronous>, transform_indices = @transform_7, window_bounds = array<i64: 1, 17>}, {transform_indices = @transform_8, window_bounds = array<i64: 1, 32, 16>}]} {
    %c0 = arith.constant 0 : index
    %c0_0 = arith.constant 0 : index
    %c0_1 = arith.constant 0 : index
    %0 = vector.load %arg2[%c0, %c0_0, %c0_1] : memref<1x32x16xf32, #tpu.memory_space<vmem>>, vector<1x32x16xf32>
    %1 = vector.shape_cast %0 : vector<1x32x16xf32> to vector<32x16xf32>
    %2 = arith.truncf %1 : vector<32x16xf32> to vector<32x16xbf16>
    %c0_2 = arith.constant 0 : index
    %c0_3 = arith.constant 0 : index
    %3 = vector.load %arg4[%c0_2, %c0_3] : memref<16x128xbf16, #tpu.memory_space<vmem>>, vector<16x128xbf16>
    %cst = arith.constant dense<0.000000e+00> : vector<32x128xf32>
    %4 = tpu.matmul %2, %3, %cst {dimension_numbers = #tpu.dot_dimension_numbers<[1], [0], [0], [1], [0, 0, 1, 1], [], []>} : vector<32x16xbf16>, vector<16x128xbf16>, vector<32x128xf32> -> vector<32x128xf32>
    %c0_4 = arith.constant 0 : index
    %c0_5 = arith.constant 0 : index
    %5 = vector.load %arg5[%c0_4, %c0_5] : memref<1x128xf32, #tpu.memory_space<vmem>>, vector<1x128xf32>
    %6 = vector.broadcast %5 : vector<1x128xf32> to vector<32x128xf32>
    %7 = arith.addf %4, %6 : vector<32x128xf32>
    %8 = arith.truncf %7 : vector<32x128xf32> to vector<32x128xbf16>
    %cst_6 = arith.constant 0xFF800000 : f32
    %9 = vector.broadcast %cst_6 : f32 to vector<32x1xf32>
    %cst_7 = arith.constant 0.000000e+00 : f32
    %10 = vector.broadcast %cst_7 : f32 to vector<32x17xf32>
    %c0_i32 = arith.constant 0 : i32
    %c32_i32 = arith.constant 32 : i32
    %11 = arith.muli %c0_i32, %c32_i32 : i32
    %12 = tpu.assume_multiple %11, 32 : i32
    %c0_8 = arith.constant 0 : index
    %13 = arith.index_cast %12 : i32 to index
    %c0_9 = arith.constant 0 : index
    %14 = vector.load %arg3[%c0_8, %13, %c0_9] : memref<1x64x16xf32, #tpu.memory_space<vmem>>, vector<1x32x16xf32>
    %15 = vector.shape_cast %14 : vector<1x32x16xf32> to vector<32x16xf32>
    %16 = arith.truncf %15 : vector<32x16xf32> to vector<32x16xbf16>
    %c0_10 = arith.constant 0 : index
    %c0_11 = arith.constant 0 : index
    %17 = vector.load %arg6[%c0_10, %c0_11] : memref<16x128xbf16, #tpu.memory_space<vmem>>, vector<16x128xbf16>
    %cst_12 = arith.constant dense<0.000000e+00> : vector<32x128xf32>
    %18 = tpu.matmul %16, %17, %cst_12 {dimension_numbers = #tpu.dot_dimension_numbers<[1], [0], [0], [1], [0, 0, 1, 1], [], []>} : vector<32x16xbf16>, vector<16x128xbf16>, vector<32x128xf32> -> vector<32x128xf32>
    %c0_13 = arith.constant 0 : index
    %c0_14 = arith.constant 0 : index
    %19 = vector.load %arg7[%c0_13, %c0_14] : memref<1x128xf32, #tpu.memory_space<vmem>>, vector<1x128xf32>
    %20 = vector.broadcast %19 : vector<1x128xf32> to vector<32x128xf32>
    %21 = arith.addf %18, %20 : vector<32x128xf32>
    %22 = arith.truncf %21 : vector<32x128xf32> to vector<32x128xbf16>
    %c0_15 = arith.constant 0 : index
    %c0_16 = arith.constant 0 : index
    %23 = vector.load %arg8[%c0_15, %c0_16] : memref<16x17xbf16, #tpu.memory_space<vmem>>, vector<16x17xbf16>
    %cst_17 = arith.constant dense<0.000000e+00> : vector<32x17xf32>
    %24 = tpu.matmul %16, %23, %cst_17 {dimension_numbers = #tpu.dot_dimension_numbers<[1], [0], [0], [1], [0, 0, 1, 1], [], []>} : vector<32x16xbf16>, vector<16x17xbf16>, vector<32x17xf32> -> vector<32x17xf32>
    %c0_18 = arith.constant 0 : index
    %c0_19 = arith.constant 0 : index
    %25 = vector.load %arg9[%c0_18, %c0_19] : memref<1x17xf32, #tpu.memory_space<vmem>>, vector<1x17xf32>
    %26 = vector.broadcast %25 : vector<1x17xf32> to vector<32x17xf32>
    %27 = arith.addf %24, %26 : vector<32x17xf32>
    %28 = arith.truncf %27 : vector<32x17xf32> to vector<32x17xbf16>
    %cst_20 = arith.constant dense<0.000000e+00> : vector<32x32xf32>
    %29 = tpu.matmul %8, %22, %cst_20 {dimension_numbers = #tpu.dot_dimension_numbers<[1], [1], [0], [0], [0, 0, 1, 0], [], []>} : vector<32x128xbf16>, vector<32x128xbf16>, vector<32x32xf32> -> vector<32x32xf32>
    %cst_21 = arith.constant dense<0xFF800000> : vector<32xf32>
    %30 = vector.multi_reduction <maximumf>, %29, %cst_21 [1] : vector<32x32xf32> to vector<32xf32>
    %31 = vector.shape_cast %30 : vector<32xf32> to vector<32x1xf32>
    %32 = arith.maximumf %9, %31 : vector<32x1xf32>
    %33 = arith.subf %9, %32 : vector<32x1xf32>
    %34 = math.exp %33 : vector<32x1xf32>
    %35 = vector.broadcast %32 : vector<32x1xf32> to vector<32x32xf32>
    %36 = arith.subf %29, %35 : vector<32x32xf32>
    %37 = arith.truncf %36 : vector<32x32xf32> to vector<32x32xbf16>
    %38 = math.exp %37 : vector<32x32xbf16>
    %39 = vector.broadcast %34 : vector<32x1xf32> to vector<32x17xf32>
    %40 = arith.mulf %39, %10 : vector<32x17xf32>
    %cst_22 = arith.constant dense<0.000000e+00> : vector<32x17xf32>
    %41 = tpu.matmul %38, %28, %cst_22 {dimension_numbers = #tpu.dot_dimension_numbers<[1], [0], [0], [1], [0, 0, 1, 1], [], []>} : vector<32x32xbf16>, vector<32x17xbf16>, vector<32x17xf32> -> vector<32x17xf32>
    %42 = arith.addf %40, %41 : vector<32x17xf32>
    %c1_i32 = arith.constant 1 : i32
    %c32_i32_23 = arith.constant 32 : i32
    %43 = arith.muli %c1_i32, %c32_i32_23 : i32
    %44 = tpu.assume_multiple %43, 32 : i32
    %c0_24 = arith.constant 0 : index
    %45 = arith.index_cast %44 : i32 to index
    %c0_25 = arith.constant 0 : index
    %46 = vector.load %arg3[%c0_24, %45, %c0_25] : memref<1x64x16xf32, #tpu.memory_space<vmem>>, vector<1x32x16xf32>
    %47 = vector.shape_cast %46 : vector<1x32x16xf32> to vector<32x16xf32>
    %48 = arith.truncf %47 : vector<32x16xf32> to vector<32x16xbf16>
    %c0_26 = arith.constant 0 : index
    %c0_27 = arith.constant 0 : index
    %49 = vector.load %arg6[%c0_26, %c0_27] : memref<16x128xbf16, #tpu.memory_space<vmem>>, vector<16x128xbf16>
    %cst_28 = arith.constant dense<0.000000e+00> : vector<32x128xf32>
    %50 = tpu.matmul %48, %49, %cst_28 {dimension_numbers = #tpu.dot_dimension_numbers<[1], [0], [0], [1], [0, 0, 1, 1], [], []>} : vector<32x16xbf16>, vector<16x128xbf16>, vector<32x128xf32> -> vector<32x128xf32>
    %c0_29 = arith.constant 0 : index
    %c0_30 = arith.constant 0 : index
    %51 = vector.load %arg7[%c0_29, %c0_30] : memref<1x128xf32, #tpu.memory_space<vmem>>, vector<1x128xf32>
    %52 = vector.broadcast %51 : vector<1x128xf32> to vector<32x128xf32>
    %53 = arith.addf %50, %52 : vector<32x128xf32>
    %54 = arith.truncf %53 : vector<32x128xf32> to vector<32x128xbf16>
    %c0_31 = arith.constant 0 : index
    %c0_32 = arith.constant 0 : index
    %55 = vector.load %arg8[%c0_31, %c0_32] : memref<16x17xbf16, #tpu.memory_space<vmem>>, vector<16x17xbf16>
    %cst_33 = arith.constant dense<0.000000e+00> : vector<32x17xf32>
    %56 = tpu.matmul %48, %55, %cst_33 {dimension_numbers = #tpu.dot_dimension_numbers<[1], [0], [0], [1], [0, 0, 1, 1], [], []>} : vector<32x16xbf16>, vector<16x17xbf16>, vector<32x17xf32> -> vector<32x17xf32>
    %c0_34 = arith.constant 0 : index
    %c0_35 = arith.constant 0 : index
    %57 = vector.load %arg9[%c0_34, %c0_35] : memref<1x17xf32, #tpu.memory_space<vmem>>, vector<1x17xf32>
    %58 = vector.broadcast %57 : vector<1x17xf32> to vector<32x17xf32>
    %59 = arith.addf %56, %58 : vector<32x17xf32>
    %60 = arith.truncf %59 : vector<32x17xf32> to vector<32x17xbf16>
    %cst_36 = arith.constant dense<0.000000e+00> : vector<32x32xf32>
    %61 = tpu.matmul %8, %54, %cst_36 {dimension_numbers = #tpu.dot_dimension_numbers<[1], [1], [0], [0], [0, 0, 1, 0], [], []>} : vector<32x128xbf16>, vector<32x128xbf16>, vector<32x32xf32> -> vector<32x32xf32>
    %cst_37 = arith.constant dense<0xFF800000> : vector<32xf32>
    %62 = vector.multi_reduction <maximumf>, %61, %cst_37 [1] : vector<32x32xf32> to vector<32xf32>
    %63 = vector.shape_cast %62 : vector<32xf32> to vector<32x1xf32>
    %64 = arith.maximumf %32, %63 : vector<32x1xf32>
    %65 = arith.subf %32, %64 : vector<32x1xf32>
    %66 = math.exp %65 : vector<32x1xf32>
    %67 = vector.broadcast %64 : vector<32x1xf32> to vector<32x32xf32>
    %68 = arith.subf %61, %67 : vector<32x32xf32>
    %69 = arith.truncf %68 : vector<32x32xf32> to vector<32x32xbf16>
    %70 = math.exp %69 : vector<32x32xbf16>
    %71 = vector.broadcast %66 : vector<32x1xf32> to vector<32x17xf32>
    %72 = arith.mulf %71, %42 : vector<32x17xf32>
    %cst_38 = arith.constant dense<0.000000e+00> : vector<32x17xf32>
    %73 = tpu.matmul %70, %60, %cst_38 {dimension_numbers = #tpu.dot_dimension_numbers<[1], [0], [0], [1], [0, 0, 1, 1], [], []>} : vector<32x32xbf16>, vector<32x17xbf16>, vector<32x17xf32> -> vector<32x17xf32>
    %74 = arith.addf %72, %73 : vector<32x17xf32>
    %c2_i32 = arith.constant 2 : i32
    %75 = vector.extract_strided_slice %74 {offsets = [0, 16], sizes = [32, 1], strides = [1, 1]} : vector<32x17xf32> to vector<32x1xf32>
    %76 = tpu.reciprocal %75 {approx = true} : vector<32x1xf32> -> vector<32x1xf32>
    %77 = vector.extract_strided_slice %74 {offsets = [0, 0], sizes = [32, 16], strides = [1, 1]} : vector<32x17xf32> to vector<32x16xf32>
    %78 = vector.broadcast %76 : vector<32x1xf32> to vector<32x16xf32>
    %79 = arith.mulf %77, %78 : vector<32x16xf32>
    %80 = arith.addf %79, %1 : vector<32x16xf32>
    %c0_39 = arith.constant 0 : index
    %c0_40 = arith.constant 0 : index
    %c0_41 = arith.constant 0 : index
    %81 = vector.load %arg10[%c0_39, %c0_40, %c0_41] : memref<1x32x16xf32, #tpu.memory_space<vmem>>, vector<1x32x16xf32>
    %82 = vector.shape_cast %81 : vector<1x32x16xf32> to vector<32x16xf32>
    %83 = vector.shape_cast %80 : vector<32x16xf32> to vector<1x32x16xf32>
    tpu.vector_store %arg10[%c0_39, %c0_40, %c0_41], %83 {strides = array<i32>} : memref<1x32x16xf32, #tpu.memory_space<vmem>>, vector<1x32x16xf32>,
    return
  }
  func.func @transform_0(%arg0: i32, %arg1: i32) -> (i32, i32, i32) {
    %c0_i32 = arith.constant 0 : i32
    %c0_i32_0 = arith.constant 0 : i32
    return %arg0, %arg1, %c0_i32 : i32, i32, i32
  }
  func.func @transform_1(%arg0: i32, %arg1: i32) -> (i32, i32, i32) {
    %c0_i32 = arith.constant 0 : i32
    %c0_i32_0 = arith.constant 0 : i32
    %c0_i32_1 = arith.constant 0 : i32
    return %arg0, %c0_i32, %c0_i32_0 : i32, i32, i32
  }
  func.func @transform_2(%arg0: i32, %arg1: i32) -> (i32, i32) {
    %c0_i32 = arith.constant 0 : i32
    %c0_i32_0 = arith.constant 0 : i32
    %c0_i32_1 = arith.constant 0 : i32
    return %c0_i32, %c0_i32_0 : i32, i32
  }
  func.func @transform_3(%arg0: i32, %arg1: i32) -> (i32, i32) {
    %c0_i32 = arith.constant 0 : i32
    %c0_i32_0 = arith.constant 0 : i32
    %c0_i32_1 = arith.constant 0 : i32
    return %c0_i32, %c0_i32_0 : i32, i32
  }
  func.func @transform_4(%arg0: i32, %arg1: i32) -> (i32, i32) {
    %c0_i32 = arith.constant 0 : i32
    %c0_i32_0 = arith.constant 0 : i32
    %c0_i32_1 = arith.constant 0 : i32
    return %c0_i32, %c0_i32_0 : i32, i32
  }
  func.func @transform_5(%arg0: i32, %arg1: i32) -> (i32, i32) {
    %c0_i32 = arith.constant 0 : i32
    %c0_i32_0 = arith.constant 0 : i32
    %c0_i32_1 = arith.constant 0 : i32
    return %c0_i32, %c0_i32_0 : i32, i32
  }
  func.func @transform_6(%arg0: i32, %arg1: i32) -> (i32, i32) {
    %c0_i32 = arith.constant 0 : i32
    %c0_i32_0 = arith.constant 0 : i32
    %c0_i32_1 = arith.constant 0 : i32
    return %c0_i32, %c0_i32_0 : i32, i32
  }
  func.func @transform_7(%arg0: i32, %arg1: i32) -> (i32, i32) {
    %c0_i32 = arith.constant 0 : i32
    %c0_i32_0 = arith.constant 0 : i32
    %c0_i32_1 = arith.constant 0 : i32
    return %c0_i32, %c0_i32_0 : i32, i32
  }
  func.func @transform_8(%arg0: i32, %arg1: i32) -> (i32, i32, i32) {
    %c0_i32 = arith.constant 0 : i32
    %c0_i32_0 = arith.constant 0 : i32
    return %arg0, %arg1, %c0_i32 : i32, i32, i32
  }
}

</mosaic_0001>

<bundles_post_ra>
// kernel: tpu_custom_call.1
= control target key start
LH: loop header
LB: loop body
LE: loop exit
PB: predicated region body
PF: predicated region fallthrough
CT: control target
= control target key end

     0   :  { %s1440_s27 = smov 0   ;;  %s1442_s28 = smov 0   ;;  %s1652_s0 = inlined_call_operand.vmem [shape: f32[2,64,16], index: 0, kind: input, shape index: {}]   ;;  %s1653_s1 = inlined_call_operand.vmem [shape: f32[2,64,16], index: 1, kind: input, shape index: {}]   ;;  %s1654_s2 = inlined_call_operand.vmem [shape: bf16[16,128], index: 2, kind: input, shape index: {}]   ;;  %s1655_s3 = inlined_call_operand.vmem [shape: f32[1,128], index: 3, kind: input, shape index: {}]   ;;  %s1656_s4 = inlined_call_operand.vmem [shape: bf16[16,128], index: 4, kind: input, shape index: {}]   ;;  %s1657_s5 = inlined_call_operand.vmem [shape: f32[1,128], index: 5, kind: input, shape index: {}]   ;;  %s1658_s6 = inlined_call_operand.vmem [shape: bf16[16,17], index: 6, kind: input, shape index: {}]   ;;  %s1659_s7 = inlined_call_operand.vmem [shape: f32[1,17], index: 7, kind: input, shape index: {}]   ;;  %s1660_s8 = inlined_call_operand.vmem [shape: f32[2,64,16], index: 8, kind: output, shape index: {}]  }
   0x1   :  { %s1444_s29 = smov 0   ;;  %s1446_s30 = smov 0  }
   0x2   :  { %s1448_s9 = smov 0  }
   0x3 LB: > { %s27_s10 = sadd.s32 1, %s1384_s29  ;;  %s30_s11 = sadd.s32 1, %s1388_s30  ;;  %s1392_s9 = sphi %s1448_s9, %s18_s9   ;;  %s1388_s30 = sphi %s1446_s30, %s1664_s30   ;;  %s1384_s29 = sphi %s1444_s29, %s1663_s29   ;;  %s1380_s28 = sphi %s1442_s28, %s1662_s28   ;;  %s1376_s27 = sphi %s1440_s27, %s1661_s27  }
   0x4   : > { %p28_p0 = scmp.ge.s32.totalorder %s27_s10, 2  ;;  %p1147_p1 = scmp.ge.s32.totalorder %s1392_s9, 1 }
   0x5   : > { %p293_p2 = scmp.lt.s32.totalorder %s1392_s9, 5 }
   0x6   : > { %s1666_s10 = smov (%p28_p0, %s27_s10), 0  ;;  %s1668_s11 = smov (!%p28_p0, %s30_s11), %s1388_s30 }
   0x7   : > { %p294_p3 = pnand %p1147_p1, %p293_p2  ;;  %p32_p4 = scmp.ge.s32.totalorder %s1668_s11, 2 }
   0x8   : > { %v1475_v0 = vld [vmem:[%s1656_s4] sm:$0xff] (!%p294_p3)   ;;  %p341_p5 = scmp.lt.s32.totalorder (!%p294_p3), %s1380_s28, 1  ;;  %s1148_s16 = sshll.u32 (!%p294_p3), %s1376_s27, 2  ;;  %vm387_vm0 = vcmask (!%p294_p3), 130048   ;;  %vm638_vm1 = vcmask (!%p294_p3), 261120  }
   0x9   : > { %s1670_s11 = smov (%p32_p4, %s1668_s11), 0  ;;  %297 = sbr.rel (%p294_p3) target bundleno = 1629 (0x65d), region = 52 }
   0xa   : > { %v1320_v1 = vld [vmem:[%s1654_s2] sm:$0xff] (!%p294_p3)   ;;  %1220 = vmatprep.subr.bf16.mxu1 (!%p294_p3), %v1475_v0  ;;  %p343_p6 = scmp.lt.s32.totalorder (!%p294_p3), %s1148_s16, 7 }
   0xb   : > { %1221 = vmatpush3.bf16.msra.mxu1 (!%p294_p3), %v1475_v0  ;;  %1214 = vmatprep.subr.bf16.mxu0 (!%p294_p3), %v1320_v1  ;;  %v1321_v14 = vld [vmem:[%s1658_s6] sm:$0xff] (!%p294_p3)  }
   0xc   : > { %1215 = vmatpush3.bf16.msra.mxu0 (!%p294_p3), %v1320_v1  ;;  %v1524_v16 = vld [vmem:[%s1657_s5] ss:$0 sm:$0xff] (!%p294_p3) }
   0xd   : > { %1226 = vmatprep.subr.bf16.mxu0 (!%p294_p3), %v1321_v14  ;;  %v1156_v22 = vld [vmem:[%s1655_s3] ss:$0 sm:$0xff] (!%p294_p3) }
   0xe   : > { %v1546_v46 = vld [vmem:[%s1659_s7] ss:$0 sm:$0xff] (!%p294_p3) }
  0x10   : > { %s1672_s28 = smov (!%p341_p5, %s1380_s28), 1  ;;  %s1674_s16 = smov (!%p343_p6, %s1148_s16), 7 }
  0x11   : > { %s1182_s17 = sshll.u32 %s1672_s28, 6  ;;  %s1149_s21 = sshll.u32 %s1672_s28, 3 }
  0x12   : > { %s1486_s20 = scalar_lea.vmem %s1653_s1, %s1182_s17  ;;  %s1492_s22 = sadd.s32 %s1149_s21, %s1674_s16 }
  0x13   : > { %v445_v2 = vld [vmem:[%s1486_s20] sm:$0xff]  ;;  %v446_v3 = vld [vmem:[%s1486_s20 + $0x8] sm:$0xff]  ;;  %v447_v4 = vld [vmem:[%s1486_s20 + $0x10] sm:$0xff]  ;;  %s1150_s23 = sshll.u32 %s1492_s22, 3 }
  0x14   : > { %v449_v5 = vpack.c.bf16 %v446_v3, %v445_v2  ;;  %v448_v6 = vld [vmem:[%s1486_s20 + $0x18] sm:$0xff]  ;;  %s348_s26 = scalar_lea.vmem %s1652_s0, %s1150_s23  ;;  %v1170_v56 = vld [vmem:[%s1486_s20 + $0x20] sm:$0xff]  ;;  %v1171_v57 = vld [vmem:[%s1486_s20 + $0x28] sm:$0xff] }
  0x15   : > { %v450_v7 = vpack.c.bf16 %v448_v6, %v447_v4  ;;  %v1502_v8 = vld [vmem:[%s348_s26] sm:$0xff]  ;;  %v1504_v9 = vld [vmem:[%s348_s26 + $0x8] sm:$0xff]  ;;  %v1506_v10 = vld [vmem:[%s348_s26 + $0x10] sm:$0xff]  ;;  %v743_v59 = vpack.c.bf16 %v1171_v57, %v1170_v56 }
  0x16   : > { %1222 = vmatprep.mubr.msk.bf16.mxu1 %vm387_vm0, %v449_v5  ;;  %v370_v11 = vpack.c.bf16 %v1504_v9, %v1502_v8  ;;  %v1510_v12 = vld [vmem:[%s348_s26 + $0x18] sm:$0xff]  ;;  %v1172_v58 = vld [vmem:[%s1486_s20 + $0x30] sm:$0xff] }
  0x17   : > { %1223 = vmatmul.mubr.msk.bf16.vlgmr.msra.gmra.mrb[0].mxu1 %vm387_vm0, %v450_v7  ;;  %v371_v13 = vpack.c.bf16 %v1510_v12, %v1506_v10  ;;  %v1173_v60 = vld [vmem:[%s1486_s20 + $0x38] sm:$0xff]  ;;  %s363_s20 = scalar_lea.vmem %s1660_s8, %s1150_s23 }
  0x18   : > { %1216 = vmatprep.mubr.msk.bf16.mxu0 %vm387_vm0, %v370_v11  ;;  %v744_v61 = vpack.c.bf16 %v1173_v60, %v1172_v58 }
  0x19   : > { %1217 = vmatmul.mubr.msk.bf16.vlgmr.msra.gmra.mrb[0].mxu0 %vm387_vm0, %v371_v13 }
  0x1a   : > { %1228 = vmatprep.mubr.msk.bf16.mxu0 %vm387_vm0, %v449_v5  ;;  %1227 = vmatpush3.bf16.msra.mxu0 %v1321_v14 }
  0x21   : > { %1229 = vmatmul.mubr.msk.bf16.vlgmr.msra.gmra.mrb[4].mxu0 %vm387_vm0, %v450_v7 }
  0xea   : > { %v1224_v15 = vpop.f32.mrb[0].mxu1 }
  0xeb   : > { %v506_v17 = vpop.f32.mrb[1].mxu1  ;;  %v515_v19 = vadd.f32 %v1224_v15, %v1524_v16 }
  0xec   : > { %v1225_v18 = vpop.f32.mrb[2].mxu1  ;;  %v507_v23 = vadd.f32 %v1524_v16, %v506_v17  ;;  %v1218_v26 = vpop.f32.mrb[0].mxu0 }
  0xed   : > { %v518_v20 = vadd.f32 %v1225_v18, %v1524_v16  ;;  %v509_v21 = vpop.f32.mrb[3].mxu1  ;;  %v437_v28 = vadd.f32 %v1218_v26, %v1156_v22  ;;  %v428_v29 = vpop.f32.mrb[1].mxu0 }
  0xee   : > { %v510_v24 = vadd.f32 %v1524_v16, %v509_v21  ;;  %v429_v30 = vadd.f32 %v1156_v22, %v428_v29  ;;  %v1219_v31 = vpop.f32.mrb[2].mxu0 }
  0xef   : > { %v522_v25 = vpack.c.bf16 %v518_v20, %v515_v19  ;;  %v440_v32 = vadd.f32 %v1219_v31, %v1156_v22  ;;  %v431_v33 = vpop.f32.mrb[3].mxu0 }
  0xf0   : > { %v521_v27 = vpack.c.bf16 %v510_v24, %v507_v23  ;;  %v432_v34 = vadd.f32 %v1156_v22, %v431_v33 }
  0xf1   : > { %v1533_v35 = vpack.c.bf16 %v440_v32, %v437_v28 }
  0xf2   : > { %1232 = vmatprep.subr.bf16.mxu1 %v521_v27  ;;  %v1535_v36 = vpack.c.bf16 %v432_v34, %v429_v30 }
  0xf3   : > { %1233 = vmatpush3.bf16.xpose.msra.mxu1 %v521_v27 }
  0xf4   : > { %1234 = vmatprep.subr.bf16.mxu1 %v522_v25  ;;  %1236 = vmatprep.mubr.bf16.mxu1 %v1535_v36  ;;  %v1230_v37 = vpop.f32.mrb[4].mxu0 }
  0xf5   : > { %v581_v47 = vadd.f32 %v1230_v37, %v1546_v46  ;;  %v572_v48 = vpop.f32.mrb[5].mxu0 }
  0xf6   : > { %v573_v49 = vadd.f32 %v1546_v46, %v572_v48  ;;  %v1231_v50 = vpop.f32.mrb[6].mxu0 }
  0xf7   : > { %v584_v51 = vadd.f32 %v1231_v50, %v1546_v46  ;;  %v575_v52 = vpop.f32.mrb[7].mxu0 }
  0xf8   : > { %v576_v53 = vadd.f32 %v1546_v46, %v575_v52 }
  0xf9   : > { %v588_v54 = vpack.c.bf16 %v584_v51, %v581_v47 }
  0xfa   : > { %v587_v55 = vpack.c.bf16 %v576_v53, %v573_v49 }
  0xfb   : > { %1235 = vmatpush3.bf16.xpose.msra.mxu1 %v522_v25 }
  0xfc   : > { %1254 = vmatprep.subr.bf16.mxu1 %v1321_v14  ;;  %1240 = vmatprep.subr.bf16.mxu0 %v587_v55 }
  0xfd   : > { %1241 = vmatpush3.bf16.msra.mxu0 %v587_v55 }
  0xfe   : > { %1242 = vmatprep.subr.bf16.mxu0 %v588_v54 }
 0x101   : > { %1243 = vmatpush3.bf16.msra.mxu0 %v588_v54 }
 0x102   : > { %1237 = vmatmul.mubr.bf16.vlgmr.msra.gmra.mrb[4].mxu1 %v1533_v35  ;;  %1248 = vmatprep.subr.bf16.mxu0 %v1475_v0 }
 0x103   : > { %1255 = vmatpush3.bf16.msra.mxu1 %v1321_v14  ;;  %1256 = vmatprep.mubr.msk.bf16.mxu1 %vm387_vm0, %v743_v59 }
 0x10a   : > { %1257 = vmatmul.mubr.msk.bf16.vlgmr.msra.gmra.mrb[8].mxu1 %vm387_vm0, %v744_v61 }
 0x1d5   : > { %v1238_v38 = vpop.f32.mrb[4].mxu1 }
 0x1d6   : > { %v623_v39 = vpop.f32.mrb[5].mxu1  ;;  %v645_v40 = vsel %vm638_vm1, %v1238_v38, -inf }
 0x1d7   : > { %646 = vmax.xlane.f32.xlu1 %v645_v40  ;;  %v1239_v41 = vpop.f32.mrb[6].mxu1  ;;  %v639_v42 = vsel %vm638_vm1, %v623_v39, -inf }
 0x1d8   : > { %640 = vmax.xlane.f32.xlu0 %v639_v42  ;;  %v626_v43 = vpop.f32.mrb[7].mxu1  ;;  %v648_v44 = vsel %vm638_vm1, %v1239_v41, -inf }
 0x1d9   : > { %v642_v45 = vsel %vm638_vm1, %v626_v43, -inf }
 0x1db   : > { %649 = vmax.xlane.f32.xlu1 %v648_v44 }
 0x1dc   : > { %643 = vmax.xlane.f32.xlu0 %v642_v45 }
 0x264   : > { %v1559_v62 = vpop.xlane.xlu1 %646 }
 0x265   : > { %v1561_v63 = vpop.xlane.xlu0 %640  ;;  %v665_v2 = vsub.f32 %v1238_v38, %v1559_v62  ;;  %v653_v52 = vsub.f32 -inf, %v1559_v62 }
 0x266   : > { %v663_v5 = vsub.f32 %v623_v39, %v1561_v63  ;;  %v651_v49 = vsub.f32 -inf, %v1561_v63 }
 0x268   : > { %v1563_v1 = vpop.xlane.xlu1 %649  ;;  %v655_v51 = vmul.f32 1.442695, %v651_v49 }
 0x269   : > { %v666_v3 = vsub.f32 %v1239_v41, %v1563_v1  ;;  %v1567_v4 = vpop.xlane.xlu0 %643  ;;  %v654_v54 = vsub.f32 -inf, %v1563_v1 }
 0x26a   : > { %v664_v6 = vsub.f32 %v626_v43, %v1567_v4  ;;  %v652_v50 = vsub.f32 -inf, %v1567_v4 }
 0x26b   : > { %v668_v7 = vpack.c.bf16 %v666_v3, %v665_v2  ;;  %v661_v60 = vmul.f32 1.442695, %v654_v54 }
 0x26c   : > { %v667_v11 = vpack.c.bf16 %v664_v6, %v663_v5  ;;  %v657_v53 = vmul.f32 1.442695, %v652_v50 }
 0x26d   : > { %v673_v13 = vmul.bf16 1069105081, %v668_v7 }
 0x26e   : > { %v670_v14 = vmul.bf16 1069105081, %v667_v11 }
 0x270   : > { %1322 = vpow.bf16 %v670_v14 }
 0x271   : > { %1324 = vpow.bf16 %v673_v13 }
 0x272   : > { %1326 = vpow2.f32 %v655_v51 }
 0x273   : > { %1328 = vpow2.f32 %v657_v53 }
 0x27b   : > { %v1323_v15 = vpop.eup %1322 }
 0x27c   : > { %v1325_v17 = vpop.eup %1324  ;;  %1244 = vmatprep.mubr.msk.bf16.mxu0 %vm638_vm1, %v1323_v15 }
 0x27d   : > { %1245 = vmatmul.mubr.msk.bf16.vlgmr.msra.gmra.mrb[8].mxu0 %vm638_vm1, %v1325_v17 }
 0x27e   : > { %1249 = vmatpush3.bf16.msra.mxu0 %v1475_v0  ;;  %1250 = vmatprep.mubr.msk.bf16.mxu0 %vm387_vm0, %v743_v59 }
 0x285   : > { %1251 = vmatmul.mubr.msk.bf16.vlgmr.msra.gmra.mrb[12].mxu0 %vm387_vm0, %v744_v61 }
 0x286   : > { %1264 = vmatprep.mubr.bf16.mxu0 %v1535_v36 }
 0x350   : > { %v1577_v18 = vpop.f32.mrb[8].mxu0 }
 0x351   : > { %v1579_v19 = vpop.f32.mrb[9].mxu0 }
 0x352   : > { %v1581_v20 = vpop.f32.mrb[10].mxu0 }
 0x353   : > { %v1583_v21 = vpop.f32.mrb[11].mxu0 }
 0x358   : > { %v1252_v22 = vpop.f32.mrb[12].mxu0 }
 0x359   : > { %v785_v23 = vpop.f32.mrb[13].mxu0  ;;  %v794_v25 = vadd.f32 %v1252_v22, %v1524_v16 }
 0x35a   : > { %v1253_v24 = vpop.f32.mrb[14].mxu0  ;;  %v786_v27 = vadd.f32 %v1524_v16, %v785_v23 }
 0x35b   : > { %v797_v0 = vadd.f32 %v1253_v24, %v1524_v16  ;;  %v788_v26 = vpop.f32.mrb[15].mxu0 }
 0x35c   : > { %v789_v28 = vadd.f32 %v1524_v16, %v788_v26 }
 0x35d   : > { %v801_v29 = vpack.c.bf16 %v797_v0, %v794_v25  ;;  %v1327_v25 = vpop.eup %1326 }
 0x35e   : > { %v800_v30 = vpack.c.bf16 %v789_v28, %v786_v27  ;;  %v1329_v27 = vpop.eup %1328  ;;  %v675_v28 = vmul.f32 0.0, %v1327_v25 }
 0x360   : > { %1260 = vmatprep.subr.bf16.mxu0 %v800_v30 }
 0x361   : > { %1261 = vmatpush3.bf16.xpose.msra.mxu0 %v800_v30  ;;  %v734_v30 = vadd.f32 %v1579_v19, %v675_v28 }
 0x362   : > { %1262 = vmatprep.subr.bf16.mxu0 %v801_v29 }
 0x369   : > { %1263 = vmatpush3.bf16.xpose.msra.mxu0 %v801_v29 }
 0x370   : > { %1265 = vmatmul.mubr.bf16.vlgmr.msra.gmra.mrb[16].mxu0 %v1533_v35  ;;  %v1258_v35 = vpop.f32.mrb[8].mxu1 }
 0x371   : > { %v836_v39 = vpop.f32.mrb[9].mxu1  ;;  %v845_v44 = vadd.f32 %v1258_v35, %v1546_v46 }
 0x372   : > { %v1259_v40 = vpop.f32.mrb[10].mxu1  ;;  %v837_v41 = vadd.f32 %v1546_v46, %v836_v39 }
 0x373   : > { %v839_v42 = vpop.f32.mrb[11].mxu1  ;;  %v848_v47 = vadd.f32 %v1259_v40, %v1546_v46 }
 0x374   : > { %v840_v43 = vadd.f32 %v1546_v46, %v839_v42  ;;  %v659_v46 = vmul.f32 1.442695, %v653_v52 }
 0x375   : > { %v852_v48 = vpack.c.bf16 %v848_v47, %v845_v44 }
 0x376   : > { %v851_v45 = vpack.c.bf16 %v840_v43, %v837_v41  ;;  %1330 = vpow2.f32 %v659_v46 }
 0x378   : > { %1268 = vmatprep.subr.bf16.mxu1 %v851_v45 }
 0x379   : > { %1269 = vmatpush3.bf16.msra.mxu1 %v851_v45 }
 0x37a   : > { %1270 = vmatprep.subr.bf16.mxu1 %v852_v48 }
 0x37d   : > { %1271 = vmatpush3.bf16.msra.mxu1 %v852_v48 }
 0x380   : > { %v1331_v29 = vpop.eup %1330 }
 0x443   : > { %v1590_v31 = vpop.f32.mrb[16].mxu0 }
 0x444   : > { %v887_v32 = vpop.f32.mrb[17].mxu0  ;;  %v908_v16 = vsel %vm638_vm1, %v1590_v31, -inf }
 0x445   : > { %v1592_v33 = vpop.f32.mrb[18].mxu0  ;;  %v902_v34 = vsel %vm638_vm1, %v887_v32, -inf }
 0x446   : > { %903 = vmax.xlane.f32.xlu0 %v902_v34  ;;  %v890_v36 = vpop.f32.mrb[19].mxu0  ;;  %v911_v38 = vsel %vm638_vm1, %v1592_v33, -inf }
 0x447   : > { %v905_v37 = vsel %vm638_vm1, %v890_v36, -inf }
 0x448   : > { %906 = vmax.xlane.f32.xlu1 %v905_v37  ;;  %v677_v37 = vmul.f32 0.0, %v1331_v29 }
 0x44a   : > { %909 = vmax.xlane.f32.xlu0 %v908_v16 }
 0x44c   : > { %912 = vmax.xlane.f32.xlu1 %v911_v38  ;;  %v736_v38 = vadd.f32 %v1577_v18, %v677_v37 }
 0x4d3   : > { %v904_v55 = vpop.xlane.xlu0 %903 }
 0x4d4   : > { %v914_v56 = vmax.f32 %v1561_v63, %v904_v55 }
 0x4d5   : > { %v907_v57 = vpop.xlane.xlu1 %906 }
 0x4d6   : > { %v918_v58 = vsub.f32 %v1561_v63, %v914_v56  ;;  %v915_v59 = vmax.f32 %v1567_v4, %v907_v57  ;;  %v930_v61 = vsub.f32 %v887_v32, %v914_v56  ;;  %v676_v32 = vmul.f32 0.0, %v1329_v27 }
 0x4d7   : > { %v910_v2 = vpop.xlane.xlu0 %909 }
 0x4d8   : > { %v922_v3 = vmul.f32 1.442695, %v918_v58  ;;  %v919_v5 = vsub.f32 %v1567_v4, %v915_v59  ;;  %v931_v6 = vsub.f32 %v890_v36, %v915_v59  ;;  %v916_v7 = vmax.f32 %v1559_v62, %v910_v2 }
 0x4d9   : > { %v913_v11 = vpop.xlane.xlu1 %912 }
 0x4da   : > { %1332 = vpow2.f32 %v922_v3  ;;  %v924_v13 = vmul.f32 1.442695, %v919_v5  ;;  %v934_v14 = vpack.c.bf16 %v931_v6, %v930_v61  ;;  %v920_v15 = vsub.f32 %v1559_v62, %v916_v7 }
 0x4db   : > { %1334 = vpow2.f32 %v661_v60  ;;  %v917_v63 = vmax.f32 %v1563_v1, %v913_v11  ;;  %v932_v23 = vsub.f32 %v1590_v31, %v916_v7 }
 0x4dc   : > { %1336 = vpow2.f32 %v924_v13  ;;  %v937_v17 = vmul.bf16 1069105081, %v934_v14  ;;  %v926_v22 = vmul.f32 1.442695, %v920_v15 }
 0x4dd   : > { %v921_v4 = vsub.f32 %v1563_v1, %v917_v63  ;;  %v933_v24 = vsub.f32 %v1592_v33, %v917_v63  ;;  %v735_v1 = vadd.f32 %v1583_v21, %v676_v32  ;;  %v1394_v21 = vmov 16  }
 0x4de   : > { %1338 = vpow.bf16 %v937_v17  ;;  %1318 = vset.pattern.permute.xlu1 %v1394_v21  ;;  %1317 = vset.pattern.permute.xlu0 %v1394_v21 }
 0x4df   : > { %1340 = vpow2.f32 %v926_v22  ;;  %v928_v0 = vmul.f32 1.442695, %v921_v4  ;;  %v935_v26 = vpack.c.bf16 %v933_v24, %v932_v23 }
 0x4e1   : > { %1342 = vpow2.f32 %v928_v0  ;;  %v940_v62 = vmul.bf16 1069105081, %v935_v26 }
 0x4e3   : > { %1344 = vpow.bf16 %v940_v62 }
 0x4e4   : > { %v1333_v34 = vpop.eup %1332 }
 0x4e5   : > { %v1335_v31 = vpop.eup %1334  ;;  %v942_v36 = vmul.f32 %v1333_v34, %v734_v30 }
 0x4e6   : > { %v1337_v33 = vpop.eup %1336  ;;  %v678_v35 = vmul.f32 0.0, %v1335_v31 }
 0x4e7   : > { %v943_v16 = vmul.f32 %v1337_v33, %v735_v1 }
 0x4e8   : > { %v737_v41 = vadd.f32 %v1581_v20, %v678_v35 }
 0x4e9   : > { %v1339_v39 = vpop.eup %1338 }
 0x4ea   : > { %v1341_v40 = vpop.eup %1340  ;;  %1272 = vmatprep.mubr.msk.bf16.mxu1 %vm638_vm1, %v1339_v39 }
 0x4eb   : > { %v944_v19 = vmul.f32 %v1341_v40, %v736_v38  ;;  %v1343_v42 = vpop.eup %1342 }
 0x4ec   : > { %v945_v43 = vmul.f32 %v1343_v42, %v737_v41 }
 0x4ee   : > { %v1345_v44 = vpop.eup %1344 }
 0x4ef   : > { %1273 = vmatmul.mubr.msk.bf16.vlgmr.msra.gmra.mrb[12].mxu1 %vm638_vm1, %v1345_v44 }
 0x5c2   : > { %v1274_v45 = vpop.f32.mrb[12].mxu1 }
 0x5c3   : > { %v1003_v47 = vadd.f32 %v1274_v45, %v944_v19  ;;  %v986_v48 = vpop.f32.mrb[13].mxu1 }
 0x5c4   : > { %v1001_v18 = vadd.f32 %v986_v48, %v942_v36  ;;  %v1275_v49 = vpop.f32.mrb[14].mxu1 }
 0x5c5   : > { %1346 = vrcp.f32 %v1003_v47  ;;  %v1004_v50 = vadd.f32 %v1275_v49, %v945_v43  ;;  %v989_v51 = vpop.f32.mrb[15].mxu1 }
 0x5c6   : > { %1348 = vrcp.f32 %v1001_v18  ;;  %v1002_v20 = vadd.f32 %v989_v51, %v943_v16 }
 0x5c8   : > { %1350 = vrcp.f32 %v1002_v20 }
 0x5c9   : > { %1352 = vrcp.f32 %v1004_v50 }
 0x5cf   : > { %v1347_v52 = vpop.eup %1346 }
 0x5d0   : > { %v1349_v53 = vpop.eup %1348  ;;  %1021 = vperm.xlu1 %1318, %v1347_v52  }
 0x5d1   : > { %1011 = vperm.xlu0 %1317, %v1349_v53  }
 0x5d2   : > { %v1351_v54 = vpop.eup %1350 }
 0x5d3   : > { %v1353_v55 = vpop.eup %1352 }
 0x5d4   : > { %1016 = vperm.xlu1 %1318, %v1351_v54  }
 0x5d8   : > { %1026 = vperm.xlu1 %1318, %v1353_v55  }
 0x64f   : > { %v1022_v56 = vpop.permute.xlu1 %1021 }
 0x650   : > { %v1031_v46 = vmul.f32 %v1022_v56, %v1003_v47  ;;  %v1012_v57 = vpop.permute.xlu0 %1011 }
 0x651   : > { %v1029_v58 = vmul.f32 %v1012_v57, %v1001_v18 }
 0x652   : > { %v1035_v59 = vadd.f32 %v1031_v46, %v1506_v10 }
 0x653   : > { %v1033_v60 = vadd.f32 %v1029_v58, %v1502_v8  ;;  %v1017_v61 = vpop.permute.xlu1 %1016 }
 0x654   : > { %1039 = vst.msk [vmem:[%s363_s20 + $0x10] sm:$0xff] %vm387_vm0, %v1035_v59  ;;  %v1030_v2 = vmul.f32 %v1017_v61, %v1002_v20 }
 0x655   : > { %1037 = vst.msk [vmem:[%s363_s20] sm:$0xff] %vm387_vm0, %v1033_v60 }
 0x656   : > { %v1034_v3 = vadd.f32 %v1030_v2, %v1504_v9 }
 0x657   : > { %v1027_v5 = vpop.permute.xlu1 %1026 }
 0x658   : > { %1038 = vst.msk [vmem:[%s363_s20 + $0x8] sm:$0xff] %vm387_vm0, %v1034_v3  ;;  %v1032_v6 = vmul.f32 %v1027_v5, %v1004_v50 }
 0x65a   : > { %v1036_v7 = vadd.f32 %v1032_v6, %v1510_v12 }
 0x65c   : > { %1040 = vst.msk [vmem:[%s363_s20 + $0x18] sm:$0xff] %vm387_vm0, %v1036_v7 }
 0x65d PF: > { %s18_s9 = sadd.s32 1, %s1392_s9   ;;  %s1661_s27 = smov %s1384_s29 }
 0x65e   : > { %p15_p7 = scmp.ge.s32.totalorder %s18_s9, 6   ;;  %s1662_s28 = smov %s1388_s30 }
 0x65f   : > { %s1663_s29 = smov %s1666_s10  ;;  %s1664_s30 = smov %s1670_s11 }
 0x660   :  { %17 = sbr.rel (!%p15_p7) target bundleno = 3 (0x3), region = 86 }

</bundles_post_ra>
